<compile_context>
chip_gen: v5e
topology: v5e:2x2
jax: 0.10.0
libtpu: 0.0.40
codegen_flags: <defaults>
</compile_context>

<pallas_src>
import functools

import jax
import jax.numpy as jnp
from jax.experimental import pallas as pl
from jax.experimental.pallas import tpu as pltpu

_LANE = 128
_TARGET_BLOCK_BYTES = 2 * 1024 * 1024   # HBM-roofline sweet spot (1-4 MiB)
_MAX_BLOCK_BYTES = 4 * 1024 * 1024      # beyond this -> C-tiled fallback
_MIN_PARALLEL_STEPS = 8                 # keep both v7x TCs fed


def _round_up(a, b):
    return ((a + b - 1) // b) * b


def _sublanes(itemsize):
    # Rows per vreg: 8 for 4-byte, 16 for 2-byte, 32 for 1-byte dtypes.
    return 8 * max(1, 4 // max(1, itemsize))


def _vmem_limit(block_bytes):
    # in + out, each double-buffered (4 live blocks) plus compiler headroom.
    return min(64 * 1024 * 1024, max(16 * 1024 * 1024, 6 * block_bytes))


# ----------------------------- main (common) path ---------------------------

def _normalize_kernel(x_ref, o_ref):
    # Block: (1, C, t_hw). Reduce over the channel (sublane) axis.
    xf = x_ref[...].astype(jnp.float32)
    sq_sum = jnp.sum(xf * xf, axis=1, keepdims=True)    # (1, 1, t_hw) fp32
    inv_norm = jax.lax.rsqrt(sq_sum)                     # EUP: free slack
    # Scale in fp32, single cast to the output dtype (no double rounding).
    o_ref[...] = (xf * inv_norm).astype(o_ref.dtype)


def _normalize_whole_c(x_flat, t_hw, hw_tiles, block_bytes):
    N, C, HW = x_flat.shape
    itemsize = jnp.dtype(x_flat.dtype).itemsize
    cost = pl.CostEstimate(
        flops=3 * N * C * HW,            # square, sum, scale
        transcendentals=N * HW,          # rsqrt per column
        bytes_accessed=2 * N * C * HW * itemsize,
    )
    return pl.pallas_call(
        _normalize_kernel,
        out_shape=jax.ShapeDtypeStruct((N, C, HW), x_flat.dtype),
        grid_spec=pltpu.PrefetchScalarGridSpec(
            num_scalar_prefetch=0,
            grid=(N, hw_tiles),
            in_specs=[pl.BlockSpec((1, C, t_hw), lambda i, j: (i, 0, j))],
            out_specs=pl.BlockSpec((1, C, t_hw), lambda i, j: (i, 0, j)),
        ),
        compiler_params=pltpu.CompilerParams(
            dimension_semantics=("parallel", "parallel"),
            vmem_limit_bytes=_vmem_limit(block_bytes),
        ),
        cost_estimate=cost,
    )(x_flat)


# ------------------------ large-C fallback (two passes) ---------------------

def _sumsq_kernel(x_ref, ss_ref, *, t_c, C):
    k = pl.program_id(2)

    @pl.when(k == 0)
    def _():
        ss_ref[...] = jnp.zeros_like(ss_ref)

    xf = x_ref[...].astype(jnp.float32)
    if C % t_c != 0:
        # Mask the ragged last C tile so padded garbage rows don't leak into
        # the reduction (ragged HW lanes are harmless: masked on store).
        row = jax.lax.broadcasted_iota(jnp.int32, xf.shape, 1)
        xf = jnp.where(row + k * t_c < C, xf, 0.0)
    ss_ref[...] += jnp.sum(xf * xf, axis=1, keepdims=True)


def _scale_kernel(x_ref, ss_ref, o_ref):
    xf = x_ref[...].astype(jnp.float32)
    o_ref[...] = (xf * jax.lax.rsqrt(ss_ref[...])).astype(o_ref.dtype)


def _normalize_tiled_c(x_flat):
    N, C, HW = x_flat.shape
    itemsize = jnp.dtype(x_flat.dtype).itemsize
    sub = _sublanes(itemsize)

    t_hw = HW if HW <= _LANE else min(_round_up(HW, _LANE), 4 * _LANE)
    t_c = max(sub, (_TARGET_BLOCK_BYTES // (t_hw * itemsize)) // sub * sub)
    t_c = min(t_c, _round_up(C, sub))
    c_tiles = pl.cdiv(C, t_c)
    hw_tiles = pl.cdiv(HW, t_hw)
    block_bytes = t_c * max(t_hw, _LANE) * itemsize

    # Pass 1: per-column sum of squares (C tiled, resident fp32 accumulator).
    sumsq = pl.pallas_call(
        functools.partial(_sumsq_kernel, t_c=t_c, C=C),
        out_shape=jax.ShapeDtypeStruct((N, 1, HW), jnp.float32),
        grid_spec=pltpu.PrefetchScalarGridSpec(
            num_scalar_prefetch=0,
            grid=(N, hw_tiles, c_tiles),
            in_specs=[pl.BlockSpec((1, t_c, t_hw), lambda i, j, k: (i, k, j))],
            out_specs=pl.BlockSpec((1, 1, t_hw), lambda i, j, k: (i, 0, j)),
        ),
        compiler_params=pltpu.CompilerParams(
            dimension_semantics=("parallel", "parallel", "arbitrary"),
            vmem_limit_bytes=_vmem_limit(block_bytes),
        ),
    )(x_flat)

    # Pass 2: broadcasted scale.
    return pl.pallas_call(
        _scale_kernel,
        out_shape=jax.ShapeDtypeStruct((N, C, HW), x_flat.dtype),
        grid_spec=pltpu.PrefetchScalarGridSpec(
            num_scalar_prefetch=0,
            grid=(N, c_tiles, hw_tiles),
            in_specs=[pl.BlockSpec((1, t_c, t_hw), lambda i, k, j: (i, k, j)),
                      pl.BlockSpec((1, 1, t_hw), lambda i, k, j: (i, 0, j))],
            out_specs=pl.BlockSpec((1, t_c, t_hw), lambda i, k, j: (i, k, j)),
        ),
        compiler_params=pltpu.CompilerParams(
            dimension_semantics=("parallel", "parallel", "parallel"),
            vmem_limit_bytes=_vmem_limit(block_bytes),
        ),
    )(x_flat, sumsq)


# --------------------------------- wrapper -----------------------------------

def normalize(x):
    """x: (N, C, H, W) -> x / ||x||_2 along C (keepdim broadcast)."""
    N, C, H, W = x.shape
    HW = H * W
    itemsize = jnp.dtype(x.dtype).itemsize
    x_flat = x.reshape(N, C, HW)

    c_padded = _round_up(max(C, 1), _sublanes(itemsize))
    row_bytes = c_padded * itemsize  # VMEM bytes per HW column of one block

    if row_bytes * _LANE > _MAX_BLOCK_BYTES:
        # C too large to hold whole even at the minimum 128-lane tile.
        out_flat = _normalize_tiled_c(x_flat)
    else:
        if HW <= _LANE:
            t_hw = HW
            hw_tiles = 1
        else:
            hw_full = _round_up(HW, _LANE)
            t_hw = max(_LANE, (_TARGET_BLOCK_BYTES // row_bytes) // _LANE * _LANE)
            t_hw = min(t_hw, hw_full)
            hw_tiles = pl.cdiv(HW, t_hw)
            # Enough parallel grid steps to balance v7x's two TensorCores.
            while t_hw > _LANE and N * hw_tiles < _MIN_PARALLEL_STEPS:
                t_hw = max(_LANE, (t_hw // 2) // _LANE * _LANE)
                hw_tiles = pl.cdiv(HW, t_hw)
        block_bytes = row_bytes * max(t_hw, _LANE)
        out_flat = _normalize_whole_c(x_flat, t_hw, hw_tiles, block_bytes)

    return out_flat.reshape(N, C, H, W)


if __name__ == "__main__":
    key = jax.random.PRNGKey(0)
    x = jax.random.normal(key, (2, 4, 16, 16), dtype=jnp.float32)

    out = normalize(x)
    jax.block_until_ready(out)

    # Reference (mirrors torch.norm(p=None, dim=1, keepdim=True)).
    ref = x / jnp.linalg.norm(x, axis=1, keepdims=True)
    assert out.shape == x.shape
    assert jnp.allclose(out, ref, atol=1e-5, rtol=1e-5)

    print("KERNEL_OK")
</pallas_src>

<mosaic_0001>
module attributes {stable_mosaic.version = 11 : i64} {
  func.func @_normalize_kernel(%arg0: i32, %arg1: i32, %arg2: memref<1x4x128xf32, #tpu.memory_space<vmem>>, %arg3: memref<1x4x128xf32, #tpu.memory_space<vmem>>) attributes {dimension_semantics = [#tpu.dimension_semantics<parallel>, #tpu.dimension_semantics<parallel>], iteration_bounds = array<i64: 2, 2>, scalar_prefetch = 0 : i64, scratch_operands = 0 : i64, tpu.core_type = #tpu.core_type<tc>, window_params = [{transform_indices = @transform_0, window_bounds = array<i64: 1, 4, 128>}, {transform_indices = @transform_1, window_bounds = array<i64: 1, 4, 128>}]} {
    %c0 = arith.constant 0 : index
    %c0_0 = arith.constant 0 : index
    %c0_1 = arith.constant 0 : index
    %0 = vector.load %arg2[%c0, %c0_0, %c0_1] : memref<1x4x128xf32, #tpu.memory_space<vmem>>, vector<1x4x128xf32>
    %1 = arith.mulf %0, %0 : vector<1x4x128xf32>
    %cst = arith.constant dense<0.000000e+00> : vector<1x128xf32>
    %2 = vector.multi_reduction <add>, %1, %cst [1] : vector<1x4x128xf32> to vector<1x128xf32>
    %3 = vector.shape_cast %2 : vector<1x128xf32> to vector<1x1x128xf32>
    %4 = math.rsqrt %3 : vector<1x1x128xf32>
    %5 = vector.broadcast %4 : vector<1x1x128xf32> to vector<1x4x128xf32>
    %6 = arith.mulf %0, %5 : vector<1x4x128xf32>
    %c0_2 = arith.constant 0 : index
    %c0_3 = arith.constant 0 : index
    %c0_4 = arith.constant 0 : index
    %7 = vector.load %arg3[%c0_2, %c0_3, %c0_4] : memref<1x4x128xf32, #tpu.memory_space<vmem>>, vector<1x4x128xf32>
    tpu.vector_store %arg3[%c0_2, %c0_3, %c0_4], %6 {strides = array<i32>} : memref<1x4x128xf32, #tpu.memory_space<vmem>>, vector<1x4x128xf32>,
    return
  }
  func.func @transform_0(%arg0: i32, %arg1: i32) -> (i32, i32, i32) {
    %c0_i32 = arith.constant 0 : i32
    %c0_i32_0 = arith.constant 0 : i32
    return %arg0, %c0_i32, %arg1 : i32, i32, i32
  }
  func.func @transform_1(%arg0: i32, %arg1: i32) -> (i32, i32, i32) {
    %c0_i32 = arith.constant 0 : i32
    %c0_i32_0 = arith.constant 0 : i32
    return %arg0, %c0_i32, %arg1 : i32, i32, i32
  }
}

</mosaic_0001>

<bundles_post_ra>
// kernel: tpu_custom_call.1
= control target key start
LH: loop header
LB: loop body
LE: loop exit
PB: predicated region body
PF: predicated region fallthrough
CT: control target
= control target key end

     0   :  { %6 = vsyncpa [#allocation3], 0  ;;  %s654_s0 = inlined_call_operand.hbm [shape: f32[2,4,256], index: 0, kind: input, shape index: {}]   ;;  %s655_s1 = inlined_call_operand.hbm [shape: f32[2,4,256], index: 1, kind: output, shape index: {}]  }
   0x1   :  { %8 = vsyncpa [#allocation3 + $0x1], 0 }
   0x2   :  { %9 = vsyncpa [#allocation4], 0 }
   0x3   :  { %11 = vsyncpa [#allocation4 + $0x1], 0  ;;  %s512_s6 = smov 0   ;;  %s514_s7 = smov 0  }
   0x4   :  { %s516_s8 = smov 0   ;;  %s518_s9 = smov 0  }
   0x5   :  { %s520_s10 = smov 0   ;;  %s522_s11 = smov 0  }
   0x6   :  { %s524_s12 = smov 0   ;;  %s526_s13 = smov 0  }
   0x7 LB: > { %s277_s14 = sadd.s32 4294967295, %s500_s13   ;;  %s278_s15 = sadd.s32 4294967294, %s500_s13   ;;  %s500_s13 = sphi %s526_s13, %s17_s13   ;;  %s496_s12 = sphi %s524_s12, %s666_s12   ;;  %s492_s11 = sphi %s522_s11, %s665_s11   ;;  %s488_s10 = sphi %s520_s10, %s664_s10   ;;  %s484_s9 = sphi %s518_s9, %s663_s9   ;;  %s480_s8 = sphi %s516_s8, %s662_s8   ;;  %s476_s7 = sphi %s514_s7, %s661_s7   ;;  %s472_s6 = sphi %s512_s6, %s660_s6  }
   0x8   : > { %s26_s16 = sadd.s32 1, %s492_s11  ;;  %s29_s17 = sadd.s32 1, %s496_s12 }
   0x9   : > { %p27_p0 = scmp.ge.s32.totalorder %s26_s16, 2  ;;  %s38_s18 = sadd.s32 1, %s480_s8 }
   0xa   : > { %p45_p1 = scmp.ne.s32.totalorder %s480_s8, %s476_s7  ;;  %p46_p2 = scmp.eq.s32.totalorder %s500_s13, 0 }
   0xb   : > { %s668_s16 = smov (%p27_p0, %s26_s16), 0  ;;  %s670_s17 = smov (!%p27_p0, %s29_s17), %s496_s12 }
   0xc   : > { %s34_s19 = ssub.s32 %s492_s11, %s668_s16  ;;  %p565_p3 = por %p46_p2, %p45_p1 }
   0xd   : > { %p31_p4 = scmp.ge.s32.totalorder %s670_s17, 2  ;;  %p51_p5 = scmp.ne.s32.totalorder %s476_s7, %s472_s6 }
   0xe   : > { %p52_p6 = scmp.eq.s32.totalorder %s277_s14, 0  ;;  %p77_p7 = scmp.eq.s32.totalorder %s277_s14, 3 }
   0xf   : > { %s672_s17 = smov (%p31_p4, %s670_s17), 0  ;;  %p83_p10 = scmp.eq.s32.totalorder %s278_s15, 3 }
  0x10   : > { %p573_p8 = por %p52_p6, %p51_p5  ;;  %p577_p9 = por %p77_p7, %p45_p1 }
  0x11   : > { %s33_s23 = ssub.s32 %s496_s12, %s672_s17  ;;  %p583_p12 = por %p83_p10, %p51_p5 }
  0x12   : > { %s35_s24 = sor.u32 %s34_s19, %s33_s23  ;;  %p304_p13 = scmp.lt.s32.totalorder %s500_s13, 4 }
  0x13   : > { %p36_p11 = scmp.eq.s32.totalorder %s35_s24, 0  ;;  %s103_s26 = sand.u32 1, %s480_s8  }
  0x14   : > { %s281_s28 = sshll.u32 %s103_s26, 2  ;;  %s282_s29 = sshll.u32 %s496_s12, 1 }
  0x15   : > { %s590_s27 = scalar_select %p36_p11, %s480_s8, %s38_s18  }
  0x16   : > { %s111_s30 = sadd.s32 %s492_s11, %s282_s29  ;;  %s107_s2 = scalar_lea.vmem [#allocation2], %s281_s28 }
  0x17   : > { %s117_s3 = sshll.u32 %s107_s2, 4  ;;  %s283_s4 = sshll.u32 %s111_s30, 2  ;;  %s118_s3 = int_to_ptr.vmem [resolvable:$true] %s117_s3 }
  0x18   : > { %s113_s15 = scalar_lea.hbm %s654_s0, %s283_s4  ;;  %p297_p0 = pnand %p304_p13, %p565_p3 }
  0x19   : > { %s115_s19 = sshll.u32 %s113_s15, 4  ;;  %p284_p1 = scmp.ge.s32.totalorder %s500_s13, 1  ;;  %s116_s19 = int_to_ptr.hbm [resolvable:$true] %s115_s19 }
  0x1a   : > { %s104_s23 = scalar_lea.sflag [#allocation3], %s103_s26  ;;  %p122_p2 = scmp.lt.s32.totalorder %s500_s13, 5 }
  0x1b   : > { %299 = dma.hbm_to_vmem [thread:$0]  (!%p297_p0), %s116_s19, 64, %s118_s3, %s104_s23  }
  0x1c   : > { %p123_p4 = pnand %p284_p1, %p122_p2 }
  0x1d   : > { %s602_s18 = sand.u32 (!%p123_p4), 1, %s476_s7  }
  0x1e   : > { %126 = sbr.rel (%p123_p4) target bundleno = 75 (0x4b), region = 24  ;;  %s285_s24 = sshll.u32 (!%p123_p4), %s602_s18, 2 }
  0x1f   : > { %s129_s28 = scalar_lea.sflag (!%p123_p4), [#allocation3], %s602_s18  ;;  %s132_s29 = scalar_lea.vmem (!%p123_p4), [#allocation2], %s285_s24 }
  0x23   : > { %463 = dma.done.wait (%p573_p8), %s129_s28, 64  }
  0x24   : > { %465 = vsyncadd (%p573_p8), %s129_s28, 4294967232  ;;  %v152_v0 = vld [vmem:[%s132_s29] sm:$0xf]  ;;  %vm154_vm0 = vcmask 1043456   ;;  %s288_s20 = sshll.u32 %s488_s10, 1  ;;  %s151_s4 = scalar_lea.vmem [#allocation5], %s285_s24 }
  0x25   : > { %v153_v1 = vmul.f32 %v152_v0, %v152_v0  ;;  %s185_s26 = sadd.s32 %s484_s9, %s288_s20  ;;  %s189_s5 = sshll.u32 %s151_s4, 4  ;;  %s190_s5 = int_to_ptr.vmem [resolvable:$true] %s189_s5 }
  0x26   : > { %s289_s21 = sshll.u32 %s185_s26, 2  ;;  %s175_s9 = scalar_lea.sflag [#allocation4], %s602_s18 }
  0x27   : > { %v155_v2 = vsel %vm154_vm0, %v153_v1, 0.0  ;;  %s187_s3 = scalar_lea.hbm %s655_s1, %s289_s21  ;;  %s422_s28 = scalar_lea.hbm %s655_s1, 16 }
  0x28   : > { %v156_v3 = vrot.slane %v155_v2, 4  ;;  %s191_s10 = sshll.u32 %s187_s3, 4  ;;  %s192_s10 = int_to_ptr.hbm [resolvable:$true] %s191_s10 }
  0x29   : > { %s416_s14 = sshra.s32 %s192_s10, 4  ;;  %s417_s14 = int_to_ptr.hbm [resolvable:$true] %s416_s14 }
  0x2a   : > { %v157_v4 = vadd.f32 %v156_v3, %v155_v2  ;;  %s418_s15 = scalar_lea.hbm %s417_s14, 4  ;;  %p423_p7 = scmp.lt.s32.totalorder %s417_s14, %s655_s1 }
  0x2b   : > { %p419_p3 = scmp.ne.s32.totalorder %s417_s14, %s418_s15  ;;  %p424_p8 = scmp.lt.s32.totalorder %s422_s28, %s418_s15 }
  0x2c   : > { %v158_v5 = vrot.slane %v157_v4, 2 }
  0x2d   : > { %p420_p5 = pnand %p419_p3, %p577_p9  ;;  %p425_p10 = por %p424_p8, %p423_p7 }
  0x2e   : > { %v159_v6 = vadd.f32 %v158_v5, %v157_v4 }
  0x2f   : > { %p421_p6 = pneg %p420_p5 }
  0x30   : > { %v160_v7 = vrot.slane %v159_v6, 1 }
  0x31   : > { %p426_p11 = pnand %p425_p10, %p421_p6 }
  0x32   : > { %v161_v8 = vadd.f32 %v160_v7, %v159_v6 }
  0x34   : > { %370 = vrsqrt.f32 %v161_v8  ;;  %vm168_vm1 = vweird.f32 %v161_v8 }
  0x3a   : > { %v371_v9 = vpop.eup %370 }
  0x3b   : > { %v163_v10 = vmul.f32 %v371_v9, %v161_v8  ;;  %vm169_vm2 = vweird.f32 %v371_v9 }
  0x3c   : > { %vm170_vm3 = vmor %vm168_vm1, %vm169_vm2 }
  0x3d   : > { %v164_v11 = vmul.f32 %v371_v9, %v163_v10 }
  0x3f   : > { %v165_v12 = vmul.f32 0.5, %v164_v11 }
  0x41   : > { %v166_v13 = vsub.f32 1.5, %v165_v12 }
  0x43   : > { %v167_v14 = vmul.f32 %v371_v9, %v166_v13 }
  0x45   : > { %v171_v15 = vsel %vm170_vm3, %v371_v9, %v167_v14 }
  0x46   : > { %v172_v16 = vmul.f32 %v171_v15, %v152_v0 }
  0x48   : > { %173 = vst [vmem:[%s151_s4] sm:$0xf] %v172_v16 }
  0x49   : > { %429 = shalt.err (!%p426_p11)
}
  0x4a   : > { %294 = dma.vmem_to_hbm [thread:$0]  (%p577_p9), %s190_s5, 64, %s192_s10, %s175_s9  }
  0x4b PF: > { %p305_p13 = scmp.ge.s32.totalorder %s500_s13, 2  ;;  %s203_s18 = sand.u32 1, %s472_s6  }
  0x4c   : > { %s204_s20 = scalar_lea.sflag [#allocation4], %s203_s18 }
  0x4d   : > { %p301_p0 = pnand %p305_p13, %p583_p12 }
  0x4f   : > { %p302_p1 = pneg %p301_p0 }
  0x51   : > { %467 = dma.done.wait (%p302_p1), %s204_s20, 64  }
  0x52   : > { %469 = vsyncadd (%p302_p1), %s204_s20, 4294967232  ;;  %s17_s13 = sadd.s32 1, %s500_s13   ;;  %s660_s6 = smov %s476_s7 }
  0x53   : > { %p14_p2 = scmp.ge.s32.totalorder %s17_s13, 6   ;;  %s661_s7 = smov %s480_s8 }
  0x54   : > { %s662_s8 = smov %s590_s27  ;;  %s663_s9 = smov %s492_s11 }
  0x55   : > { %s664_s10 = smov %s496_s12  ;;  %s665_s11 = smov %s668_s16 }
  0x56   : > { %s666_s12 = smov %s672_s17  ;;  %16 = sbr.rel (!%p14_p2) target bundleno = 7 (0x7), region = 69 }
  0x5b   :  { %210 = vsyncpa [#allocation3], 1 }
  0x5c   :  { %212 = vsyncpa [#allocation3 + $0x1], 1 }
  0x5d   :  { %213 = vsyncpa [#allocation4], 1 }
  0x5e   :  { %215 = vsyncpa [#allocation4 + $0x1], 1 }

</bundles_post_ra>
